<compile_context>
chip_gen: v6e
topology: v6e:2x2x1
jax: 0.10.0
libtpu: 0.0.40
codegen_flags: <defaults>
</compile_context>

<pallas_src>
import functools

import jax
import jax.numpy as jnp
from jax import lax
from jax.experimental import pallas as pl
from jax.experimental.pallas import tpu as pltpu

_EPSILON = 1e-6


def _iou_loss_kernel(pred_ref, label_ref, inter_ref, upi_ref,
                     inter_acc, upi_acc, *, hw, tile, tiles_per_split,
                     needs_mask):
    # pred_ref : [1, C, T]      logits (f32 or bf16; upcast in-register)
    # label_ref: [1, 1, T]      int32 class ids
    # inter_ref: [1, 1, C, 1]   sum(p * onehot) for this (b, split)
    # upi_ref  : [1, 1, C, 1]   sum(p^2 + onehot) for this (b, split)
    # inter_acc, upi_acc: [C, 1] fp32 VMEM accumulators
    t = pl.program_id(2)

    @pl.when(t == 0)
    def _():
        inter_acc[...] = jnp.zeros_like(inter_acc)
        upi_acc[...] = jnp.zeros_like(upi_acc)

    logits = pred_ref[0].astype(jnp.float32)        # [C, T]
    labels = label_ref[0]                           # [1, T] int32

    if needs_mask:
        # Ragged tail: pixels beyond the true HW (only possible in the last
        # tile(s)) are neutralized.  Mask logits BEFORE exp (no Inf*0 = NaN).
        s = pl.program_id(1)
        base = (s * tiles_per_split + t) * tile
        pix = base + lax.broadcasted_iota(jnp.int32, (1, tile), 1)
        valid = pix < hw                            # [1, T] bool
        logits = jnp.where(valid, logits, 0.0)
        labels = jnp.where(valid, labels, -1)

    # Numerically stable softmax over the class (sublane) axis; one EUP
    # reciprocal per pixel instead of C divides.
    m = jnp.max(logits, axis=0, keepdims=True)      # [1, T]
    e = jnp.exp(logits - m)                         # [C, T]
    denom = jnp.sum(e, axis=0, keepdims=True)       # [1, T]
    p = e * pl.reciprocal(denom, approx=True)       # [C, T]

    if needs_mask:
        p = p * valid.astype(jnp.float32)           # zero padded pixels

    # One-hot mask along the class axis (idempotent => onehot^2 == onehot).
    class_iota = lax.broadcasted_iota(jnp.int32, p.shape, 0)   # [C, T]
    onehot = (labels == class_iota).astype(jnp.float32)        # [C, T]

    # Per-tile lane reduction (XLU) into tiny [C, 1] accumulators: no
    # read-modify-write of a [C, tile] buffer, minimal vst pressure.
    inter_acc[...] += jnp.sum(p * onehot, axis=1, keepdims=True)
    upi_acc[...] += jnp.sum(p * p + onehot, axis=1, keepdims=True)

    @pl.when(t == pl.num_programs(2) - 1)
    def _():
        inter_ref[0, 0] = inter_acc[...]
        upi_ref[0, 0] = upi_acc[...]


def iou_loss(y_pred, y_true, *, hw_tile=32768,
             vmem_budget_bytes=16 * 1024 * 1024):
    """y_pred: [B, C, H, W] float logits; y_true: [B, H, W] (or [B,1,H,W]) ints."""
    B, C, H, W = y_pred.shape
    if y_true.ndim == 4:                 # mirrors the torch module's squeeze(1)
        y_true = y_true.reshape(B, H, W)
    HW = H * W

    # Pure reshapes: no transpose, no pad, no dtype cast of the big tensor.
    pred = y_pred.reshape(B, C, HW)
    labels = y_true.reshape(B, 1, HW)
    if labels.dtype != jnp.int32:
        labels = labels.astype(jnp.int32)

    # Largest 128-multiple lane tile that fits the double-buffered VMEM budget
    # (pred block C*T*itemsize + label block T*4, x2 buffers each).
    itemsize = jnp.dtype(pred.dtype).itemsize
    per_lane = 2 * (C * itemsize + 4)
    max_t = max(128, (vmem_budget_bytes // per_lane) // 128 * 128)
    hw_rounded = pl.cdiv(HW, 128) * 128
    tile = int(min(hw_rounded, max_t, max(128, (hw_tile // 128) * 128)))

    n_blocks = pl.cdiv(HW, tile)
    # When B is 1 (or odd), split the HW reduction across two "parallel" grid
    # entries so both v7x TensorCores get work; harmless on 1-TC chips (grid
    # axes are just loops there).
    n_splits = 2 if (B % 2 == 1 and n_blocks >= 2) else 1
    tiles_per_split = pl.cdiv(n_blocks, n_splits)
    needs_mask = (n_splits * tiles_per_split * tile) != HW

    if n_splits * tiles_per_split > n_blocks:
        # Overshoot tiles (only when n_blocks doesn't divide by n_splits) are
        # clamped to the last real block; they are fully masked in-kernel.
        def hw_block(s, t):
            return jnp.minimum(s * tiles_per_split + t, n_blocks - 1)
    else:
        def hw_block(s, t):
            return s * tiles_per_split + t

    kernel = functools.partial(
        _iou_loss_kernel, hw=HW, tile=tile,
        tiles_per_split=tiles_per_split, needs_mask=needs_mask)

    inter, upi = pl.pallas_call(
        kernel,
        out_shape=(jax.ShapeDtypeStruct((B, n_splits, C, 1), jnp.float32),
                   jax.ShapeDtypeStruct((B, n_splits, C, 1), jnp.float32)),
        grid_spec=pltpu.PrefetchScalarGridSpec(
            num_scalar_prefetch=0,
            grid=(B, n_splits, tiles_per_split),
            in_specs=[
                pl.BlockSpec((1, C, tile), lambda b, s, t: (b, 0, hw_block(s, t))),
                pl.BlockSpec((1, 1, tile), lambda b, s, t: (b, 0, hw_block(s, t))),
            ],
            out_specs=[
                pl.BlockSpec((1, 1, C, 1), lambda b, s, t: (b, s, 0, 0)),
                pl.BlockSpec((1, 1, C, 1), lambda b, s, t: (b, s, 0, 0)),
            ],
            scratch_shapes=[
                pltpu.VMEM((C, 1), jnp.float32),
                pltpu.VMEM((C, 1), jnp.float32),
            ],
        ),
        compiler_params=pltpu.CompilerParams(
            dimension_semantics=("parallel", "parallel", "arbitrary"),
            vmem_limit_bytes=32 * 1024 * 1024),
    )(pred, labels)

    # Combine per-split partial sums, then the trivial epilogue in the wrapper.
    inter_bc = jnp.sum(inter[..., 0], axis=1)        # [B, C]
    upi_bc = jnp.sum(upi[..., 0], axis=1)            # [B, C]
    union = upi_bc - inter_bc
    iou = (inter_bc + _EPSILON) / (union + _EPSILON)
    return 1.0 - jnp.mean(iou)


def _reference_iou_loss(y_pred, y_true):
    """Pure-JAX reference mirroring the PyTorch forward exactly."""
    num_classes = y_pred.shape[1]
    onehot = jnp.eye(num_classes, dtype=jnp.float32)[y_true]          # [B,H,W,C]
    onehot = jnp.transpose(onehot, (0, 3, 1, 2))                      # [B,C,H,W]
    proba = jax.nn.softmax(y_pred.astype(jnp.float32), axis=1)
    intersection = jnp.sum(proba * onehot, axis=(2, 3))
    union = jnp.sum(proba ** 2 + onehot ** 2, axis=(2, 3)) - intersection
    iou = (intersection + _EPSILON) / (union + _EPSILON)
    return 1.0 - jnp.mean(iou)


if __name__ == "__main__":
    key = jax.random.PRNGKey(0)
    k1, k2, k3, k4 = jax.random.split(key, 4)

    # Test 1: f32 logits, tile divides HW exactly (no masking path).
    B, C, H, W = 2, 4, 16, 16
    y_pred = jax.random.normal(k1, (B, C, H, W), dtype=jnp.float32)
    y_true = jax.random.randint(k2, (B, H, W), 0, C, dtype=jnp.int32)
    loss = iou_loss(y_pred, y_true)
    jax.block_until_ready(loss)
    ref = _reference_iou_loss(y_pred, y_true)
    assert jnp.allclose(loss, ref, atol=2e-3, rtol=2e-3), (loss, ref)

    # Same inputs with a [B, 1, H, W] label tensor (torch squeeze(1) path).
    loss4d = iou_loss(y_pred, y_true[:, None])
    jax.block_until_ready(loss4d)
    assert jnp.allclose(loss4d, ref, atol=2e-3, rtol=2e-3), (loss4d, ref)

    # Test 2: B=1 -> HW split across two parallel grid entries, ragged tail
    # masking + clamped overshoot tile, C not a multiple of 8.
    B2, C2, H2, W2 = 1, 3, 24, 24
    y_pred2 = jax.random.normal(k3, (B2, C2, H2, W2), dtype=jnp.float32)
    y_true2 = jax.random.randint(k4, (B2, H2, W2), 0, C2, dtype=jnp.int32)
    loss2 = iou_loss(y_pred2, y_true2, hw_tile=128)
    jax.block_until_ready(loss2)
    ref2 = _reference_iou_loss(y_pred2, y_true2)
    assert jnp.allclose(loss2, ref2, atol=2e-3, rtol=2e-3), (loss2, ref2)

    # Test 3: bf16 logits fed straight in (upcast in-register inside kernel).
    loss3 = iou_loss(y_pred.astype(jnp.bfloat16), y_true)
    jax.block_until_ready(loss3)
    ref3 = _reference_iou_loss(y_pred.astype(jnp.bfloat16), y_true)
    assert jnp.allclose(loss3, ref3, atol=5e-3, rtol=5e-3), (loss3, ref3)

    print("KERNEL_OK")
</pallas_src>

<mosaic_0001>
module attributes {stable_mosaic.version = 11 : i64} {
  func.func @_iou_loss_kernel(%arg0: i32, %arg1: i32, %arg2: i32, %arg3: memref<1x4x256xf32, #tpu.memory_space<vmem>>, %arg4: memref<1x1x256xi32, #tpu.memory_space<vmem>>, %arg5: memref<1x1x4x1xf32, #tpu.memory_space<vmem>>, %arg6: memref<1x1x4x1xf32, #tpu.memory_space<vmem>>, %arg7: memref<4x1xf32, #tpu.memory_space<vmem>>, %arg8: memref<4x1xf32, #tpu.memory_space<vmem>>) attributes {dimension_semantics = [#tpu.dimension_semantics<parallel>, #tpu.dimension_semantics<parallel>, #tpu.dimension_semantics<arbitrary>], iteration_bounds = array<i64: 2, 1, 1>, scalar_prefetch = 0 : i64, scratch_operands = 2 : i64, tpu.core_type = #tpu.core_type<tc>, window_params = [{transform_indices = @transform_0, window_bounds = array<i64: 1, 4, 256>}, {transform_indices = @transform_1, window_bounds = array<i64: 1, 1, 256>}, {transform_indices = @transform_2, window_bounds = array<i64: 1, 1, 4, 1>}, {transform_indices = @transform_3, window_bounds = array<i64: 1, 1, 4, 1>}]} {
    %c0_i32 = arith.constant 0 : i32
    %0 = arith.cmpi eq, %arg2, %c0_i32 : i32
    %1 = arith.extui %0 : i1 to i32
    %c0_i32_0 = arith.constant 0 : i32
    %2 = arith.cmpi ne, %1, %c0_i32_0 : i32
    scf.if %2 {
      %cst_19 = arith.constant 0.000000e+00 : f32
      %38 = vector.broadcast %cst_19 : f32 to vector<4x1xf32>
      %c0_20 = arith.constant 0 : index
      %c0_21 = arith.constant 0 : index
      %39 = vector.load %arg7[%c0_20, %c0_21] : memref<4x1xf32, #tpu.memory_space<vmem>>, vector<4x1xf32>
      tpu.vector_store %arg7[%c0_20, %c0_21], %38 {strides = array<i32>} : memref<4x1xf32, #tpu.memory_space<vmem>>, vector<4x1xf32>,
      %cst_22 = arith.constant 0.000000e+00 : f32
      %40 = vector.broadcast %cst_22 : f32 to vector<4x1xf32>
      %c0_23 = arith.constant 0 : index
      %c0_24 = arith.constant 0 : index
      %41 = vector.load %arg8[%c0_23, %c0_24] : memref<4x1xf32, #tpu.memory_space<vmem>>, vector<4x1xf32>
      tpu.vector_store %arg8[%c0_23, %c0_24], %40 {strides = array<i32>} : memref<4x1xf32, #tpu.memory_space<vmem>>, vector<4x1xf32>,
    } else {
    }
    %c0 = arith.constant 0 : index
    %c0_1 = arith.constant 0 : index
    %c0_2 = arith.constant 0 : index
    %3 = vector.load %arg3[%c0, %c0_1, %c0_2] : memref<1x4x256xf32, #tpu.memory_space<vmem>>, vector<1x4x256xf32>
    %4 = vector.shape_cast %3 : vector<1x4x256xf32> to vector<4x256xf32>
    %c0_3 = arith.constant 0 : index
    %c0_4 = arith.constant 0 : index
    %c0_5 = arith.constant 0 : index
    %5 = vector.load %arg4[%c0_3, %c0_4, %c0_5] : memref<1x1x256xi32, #tpu.memory_space<vmem>>, vector<1x1x256xi32>
    %6 = vector.shape_cast %5 : vector<1x1x256xi32> to vector<1x256xi32>
    %cst = arith.constant dense<0xFF800000> : vector<256xf32>
    %7 = vector.multi_reduction <maximumf>, %4, %cst [0] : vector<4x256xf32> to vector<256xf32>
    %8 = vector.shape_cast %7 : vector<256xf32> to vector<1x256xf32>
    %9 = vector.broadcast %8 : vector<1x256xf32> to vector<4x256xf32>
    %10 = arith.subf %4, %9 : vector<4x256xf32>
    %11 = math.exp %10 : vector<4x256xf32>
    %cst_6 = arith.constant dense<0.000000e+00> : vector<256xf32>
    %12 = vector.multi_reduction <add>, %11, %cst_6 [0] : vector<4x256xf32> to vector<256xf32>
    %13 = vector.shape_cast %12 : vector<256xf32> to vector<1x256xf32>
    %14 = tpu.reciprocal %13 {approx = true} : vector<1x256xf32> -> vector<1x256xf32>
    %15 = vector.broadcast %14 : vector<1x256xf32> to vector<4x256xf32>
    %16 = arith.mulf %11, %15 : vector<4x256xf32>
    %17 = tpu.iota {dimensions = array<i32: 0>} : vector<4x256xi32>
    %18 = vector.broadcast %6 : vector<1x256xi32> to vector<4x256xi32>
    %19 = arith.cmpi eq, %18, %17 : vector<4x256xi32>
    %20 = arith.extui %19 : vector<4x256xi1> to vector<4x256xi32>
    %21 = arith.sitofp %20 : vector<4x256xi32> to vector<4x256xf32>
    %c0_7 = arith.constant 0 : index
    %c0_8 = arith.constant 0 : index
    %22 = vector.load %arg7[%c0_7, %c0_8] : memref<4x1xf32, #tpu.memory_space<vmem>>, vector<4x1xf32>
    %23 = arith.mulf %16, %21 : vector<4x256xf32>
    %cst_9 = arith.constant dense<0.000000e+00> : vector<4xf32>
    %24 = vector.multi_reduction <add>, %23, %cst_9 [1] : vector<4x256xf32> to vector<4xf32>
    %25 = vector.shape_cast %24 : vector<4xf32> to vector<4x1xf32>
    %26 = arith.addf %22, %25 : vector<4x1xf32>
    %c0_10 = arith.constant 0 : index
    %c0_11 = arith.constant 0 : index
    %27 = vector.load %arg7[%c0_10, %c0_11] : memref<4x1xf32, #tpu.memory_space<vmem>>, vector<4x1xf32>
    tpu.vector_store %arg7[%c0_10, %c0_11], %26 {strides = array<i32>} : memref<4x1xf32, #tpu.memory_space<vmem>>, vector<4x1xf32>,
    %c0_12 = arith.constant 0 : index
    %c0_13 = arith.constant 0 : index
    %28 = vector.load %arg8[%c0_12, %c0_13] : memref<4x1xf32, #tpu.memory_space<vmem>>, vector<4x1xf32>
    %29 = arith.mulf %16, %16 : vector<4x256xf32>
    %30 = arith.addf %29, %21 : vector<4x256xf32>
    %cst_14 = arith.constant dense<0.000000e+00> : vector<4xf32>
    %31 = vector.multi_reduction <add>, %30, %cst_14 [1] : vector<4x256xf32> to vector<4xf32>
    %32 = vector.shape_cast %31 : vector<4xf32> to vector<4x1xf32>
    %33 = arith.addf %28, %32 : vector<4x1xf32>
    %c0_15 = arith.constant 0 : index
    %c0_16 = arith.constant 0 : index
    %34 = vector.load %arg8[%c0_15, %c0_16] : memref<4x1xf32, #tpu.memory_space<vmem>>, vector<4x1xf32>
    tpu.vector_store %arg8[%c0_15, %c0_16], %33 {strides = array<i32>} : memref<4x1xf32, #tpu.memory_space<vmem>>, vector<4x1xf32>,
    %c0_i32_17 = arith.constant 0 : i32
    %35 = arith.cmpi eq, %arg2, %c0_i32_17 : i32
    %36 = arith.extui %35 : i1 to i32
    %c0_i32_18 = arith.constant 0 : i32
    %37 = arith.cmpi ne, %36, %c0_i32_18 : i32
    scf.if %37 {
      %c0_19 = arith.constant 0 : index
      %c0_20 = arith.constant 0 : index
      %38 = vector.load %arg7[%c0_19, %c0_20] : memref<4x1xf32, #tpu.memory_space<vmem>>, vector<4x1xf32>
      %c0_21 = arith.constant 0 : index
      %c0_22 = arith.constant 0 : index
      %c0_23 = arith.constant 0 : index
      %c0_24 = arith.constant 0 : index
      %39 = vector.load %arg5[%c0_21, %c0_22, %c0_23, %c0_24] : memref<1x1x4x1xf32, #tpu.memory_space<vmem>>, vector<1x1x4x1xf32>
      %40 = vector.shape_cast %39 : vector<1x1x4x1xf32> to vector<4x1xf32>
      %41 = vector.shape_cast %38 : vector<4x1xf32> to vector<1x1x4x1xf32>
      tpu.vector_store %arg5[%c0_21, %c0_22, %c0_23, %c0_24], %41 {strides = array<i32>} : memref<1x1x4x1xf32, #tpu.memory_space<vmem>>, vector<1x1x4x1xf32>,
      %c0_25 = arith.constant 0 : index
      %c0_26 = arith.constant 0 : index
      %42 = vector.load %arg8[%c0_25, %c0_26] : memref<4x1xf32, #tpu.memory_space<vmem>>, vector<4x1xf32>
      %c0_27 = arith.constant 0 : index
      %c0_28 = arith.constant 0 : index
      %c0_29 = arith.constant 0 : index
      %c0_30 = arith.constant 0 : index
      %43 = vector.load %arg6[%c0_27, %c0_28, %c0_29, %c0_30] : memref<1x1x4x1xf32, #tpu.memory_space<vmem>>, vector<1x1x4x1xf32>
      %44 = vector.shape_cast %43 : vector<1x1x4x1xf32> to vector<4x1xf32>
      %45 = vector.shape_cast %42 : vector<4x1xf32> to vector<1x1x4x1xf32>
      tpu.vector_store %arg6[%c0_27, %c0_28, %c0_29, %c0_30], %45 {strides = array<i32>} : memref<1x1x4x1xf32, #tpu.memory_space<vmem>>, vector<1x1x4x1xf32>,
    } else {
    }
    return
  }
  func.func @transform_0(%arg0: i32, %arg1: i32, %arg2: i32) -> (i32, i32, i32) {
    %c1_i32 = arith.constant 1 : i32
    %0 = arith.muli %arg1, %c1_i32 : i32
    %1 = arith.addi %0, %arg2 : i32
    %c0_i32 = arith.constant 0 : i32
    %c0_i32_0 = arith.constant 0 : i32
    return %arg0, %c0_i32, %1 : i32, i32, i32
  }
  func.func @transform_1(%arg0: i32, %arg1: i32, %arg2: i32) -> (i32, i32, i32) {
    %c1_i32 = arith.constant 1 : i32
    %0 = arith.muli %arg1, %c1_i32 : i32
    %1 = arith.addi %0, %arg2 : i32
    %c0_i32 = arith.constant 0 : i32
    %c0_i32_0 = arith.constant 0 : i32
    return %arg0, %c0_i32, %1 : i32, i32, i32
  }
  func.func @transform_2(%arg0: i32, %arg1: i32, %arg2: i32) -> (i32, i32, i32, i32) {
    %c0_i32 = arith.constant 0 : i32
    %c0_i32_0 = arith.constant 0 : i32
    %c0_i32_1 = arith.constant 0 : i32
    return %arg0, %arg1, %c0_i32, %c0_i32_0 : i32, i32, i32, i32
  }
  func.func @transform_3(%arg0: i32, %arg1: i32, %arg2: i32) -> (i32, i32, i32, i32) {
    %c0_i32 = arith.constant 0 : i32
    %c0_i32_0 = arith.constant 0 : i32
    %c0_i32_1 = arith.constant 0 : i32
    return %arg0, %arg1, %c0_i32, %c0_i32_0 : i32, i32, i32, i32
  }
}

</mosaic_0001>

<bundles_post_ra>
// kernel: tpu_custom_call.1
= control target key start
LH: loop header
LB: loop body
LE: loop exit
PB: predicated region body
PF: predicated region fallthrough
CT: control target
= control target key end

     0   :  { %9 = vsyncpa [#allocation5], 0  ;;  %s930_s0 = inlined_call_operand.hbm [shape: f32[2,4,256], index: 0, kind: input, shape index: {}]   ;;  %s931_s1 = inlined_call_operand.hbm [shape: s32[2,1,256], index: 1, kind: input, shape index: {}]   ;;  %s932_s2 = inlined_call_operand.vmem [shape: f32[2,1,4,1], index: 2, kind: output, shape index: {0}]   ;;  %s933_s3 = inlined_call_operand.vmem [shape: f32[2,1,4,1], index: 3, kind: output, shape index: {1}]  }
   0x1   :  { %11 = vsyncpa [#allocation5 + $0x1], 0 }
   0x2   :  { %12 = vsyncpa [#allocation7], 0 }
   0x3   :  { %14 = vsyncpa [#allocation7 + $0x1], 0  ;;  %s782_s12 = smov 0   ;;  %s784_s13 = smov 0  }
   0x4   :  { %s786_s14 = smov 0   ;;  %s788_s15 = smov 0  }
   0x5   :  { %s790_s16 = smov 0   ;;  %s792_s17 = smov 0  }
   0x6 LB: > { %s558_s18 = sadd.s32 4294967295, %s757_s17   ;;  %s39_s19 = sadd.s32 1, %s753_s16  ;;  %s757_s17 = sphi %s792_s17, %s20_s17   ;;  %s753_s16 = sphi %s790_s16, %s942_s16   ;;  %s749_s15 = sphi %s788_s15, %s941_s15   ;;  %s745_s14 = sphi %s786_s14, %s940_s14   ;;  %s741_s13 = sphi %s784_s13, %s939_s13   ;;  %s737_s12 = sphi %s782_s12, %s938_s12  }
   0x7   : > { %p41_p0 = scmp.ge.s32.totalorder %s39_s19, 2  ;;  %s50_s20 = sadd.s32 1, %s745_s14 }
   0x8   : > { %p57_p1 = scmp.ne.s32.totalorder %s745_s14, %s741_s13  ;;  %p58_p2 = scmp.eq.s32.totalorder %s757_s17, 0 }
   0x9   : > { %s944_s19 = smov (%p41_p0, %s39_s19), 0  ;;  %p63_p4 = scmp.ne.s32.totalorder %s741_s13, %s737_s12 }
   0xa   : > { %p818_p3 = por %p58_p2, %p57_p1  ;;  %s45_s22 = ssub.s32 %s753_s16, %s944_s19 }
   0xb   : > { %p64_p5 = scmp.eq.s32.totalorder %s558_s18, 0  ;;  %p48_p6 = scmp.eq.s32.totalorder %s45_s22, 0 }
   0xc   : > { %p590_p8 = scmp.lt.s32.totalorder %s757_s17, 2  ;;  %s834_s25 = sand.u32 1, %s745_s14  }
   0xd   : > { %p825_p7 = por %p64_p5, %p63_p4  ;;  %s577_s26 = sshll.u32 %s753_s16, 7 }
   0xe   : > { %s831_s24 = scalar_select %p48_p6, %s745_s14, %s50_s20  }
   0xf   : > { %s562_s27 = sshll.u32 %s834_s25, 3  ;;  %s186_s30 = scalar_lea.hbm %s930_s0, %s577_s26 }
  0x10   : > { %s177_s4 = scalar_lea.vmem [#allocation4], %s562_s27  ;;  %p843_p9 = pnand %p590_p8, %p818_p3 }
  0x11   : > { %s188_s5 = sshll.u32 %s177_s4, 4  ;;  %p568_p10 = scmp.ge.s32.totalorder %s757_s17, 1  ;;  %s189_s5 = int_to_ptr.vmem [resolvable:$true] %s188_s5 }
  0x12   : > { %p215_p11 = scmp.lt.s32.totalorder %s757_s17, 3  ;;  %s174_s7 = scalar_lea.sflag [#allocation5], %s834_s25 }
  0x13   : > { %p649_p12 = pneg %p843_p9  ;;  %s660_s8 = scalar_lea.vmem %s189_s5, 128 }
  0x14   : > { %p661_p13 = scmp.ne.s32.totalorder %s189_s5, %s660_s8  ;;  %s759_s9 = smov [#allocation4]  }
  0x15   : > { %s665_s10 = sshll.u32 %s759_s9, 4  ;;  %s666_s10 = int_to_ptr.vmem [resolvable:$false] %s665_s10 }
  0x16   : > { %p663_p0 = pnand %p661_p13, %p649_p12  ;;  %s667_s11 = scalar_lea.vmem %s666_s10, 256 }
  0x17   : > { %p668_p2 = scmp.lt.s32.totalorder %s189_s5, %s666_s10  ;;  %p669_p3 = scmp.lt.s32.totalorder %s667_s11, %s660_s8 }
  0x18   : > { %p664_p1 = pneg %p663_p0 }
  0x19   : > { %p670_p4 = por %p669_p3, %p668_p2 }
  0x1b   : > { %p671_p5 = pnand %p670_p4, %p664_p1 }
  0x1d   : > { %674 = shalt.err (!%p671_p5)
}
  0x1e   : > { %586 = dma.hbm_to_vmem [thread:$0]  (!%p843_p9), %s186_s30, 128, %s189_s5, %s174_s7  }
  0x1f   : > { %p861_p6 = pnand %p568_p10, %p215_p11  ;;  %s565_s18 = sshll.u32 %s834_s25, 1 }
  0x20   : > { %s578_s20 = sshll.u32 %s753_s16, 5  ;;  %s199_s27 = scalar_lea.vmem [#allocation6], %s565_s18 }
  0x21   : > { %s208_s26 = scalar_lea.hbm %s931_s1, %s578_s20  ;;  %s210_s28 = sshll.u32 %s199_s27, 4  ;;  %s211_s28 = int_to_ptr.vmem [resolvable:$true] %s210_s28 }
  0x22   : > { %s196_s29 = scalar_lea.sflag [#allocation7], %s834_s25  ;;  %s688_s4 = scalar_lea.vmem %s211_s28, 32 }
  0x23   : > { %p689_p8 = scmp.ne.s32.totalorder %s211_s28, %s688_s4  ;;  %s760_s30 = smov [#allocation6]  }
  0x24   : > { %s693_s5 = sshll.u32 %s760_s30, 4  ;;  %s694_s5 = int_to_ptr.vmem [resolvable:$false] %s693_s5 }
  0x25   : > { %p691_p13 = pnand %p689_p8, %p649_p12  ;;  %s695_s7 = scalar_lea.vmem %s694_s5, 64 }
  0x26   : > { %p696_p10 = scmp.lt.s32.totalorder %s211_s28, %s694_s5  ;;  %p697_p11 = scmp.lt.s32.totalorder %s695_s7, %s688_s4 }
  0x27   : > { %p692_p0 = pneg %p691_p13 }
  0x28   : > { %p698_p1 = por %p697_p11, %p696_p10 }
  0x2a   : > { %p699_p2 = pnand %p698_p1, %p692_p0 }
  0x2c   : > { %702 = shalt.err (!%p699_p2)
}
  0x2d   : > { %589 = dma.hbm_to_vmem [thread:$0]  (!%p843_p9), %s208_s26, 32, %s211_s28, %s196_s29  }
  0x2e   : > { %219 = sbr.rel (%p861_p6) target bundleno = 284 (0x11c), region = 28  ;;  %s221_s25 = sand.u32 (!%p861_p6), 1, %s741_s13  }
  0x2f   : > { %s569_s8 = sshll.u32 (!%p861_p6), %s221_s25, 3  ;;  %s222_s9 = scalar_lea.sflag (!%p861_p6), [#allocation5], %s221_s25 }
  0x30   : > { %s225_s10 = scalar_lea.vmem (!%p861_p6), [#allocation4], %s569_s8 }
  0x33   : > { %728 = dma.done.wait (%p825_p7), %s222_s9, 128  }
  0x34   : > { %730 = vsyncadd (%p825_p7), %s222_s9, 4294967168  ;;  %s570_s11 = sshll.u32 %s221_s25, 1  ;;  %s231_s18 = scalar_lea.sflag [#allocation7], %s221_s25 }
  0x35   : > { %s883_s20 = scalar_lea.vmem [#allocation6], %s570_s11 }
  0x36   : > { %732 = dma.done.wait (%p825_p7), %s231_s18, 32  }
  0x37   : > { %734 = vsyncadd (%p825_p7), %s231_s18, 4294967264  ;;  %vm293_vm0 = vcmask 3072   ;;  %v761_v0 = vmov 0.0   ;;  %vm301_vm1 = vcmask 1043456   ;;  %v296_v1 = vld [vmem:[%s225_s10] sm:$0xff]  ;;  %v347_v31 = vlaneseq  ;;  %p275_p7 = scmp.lt.s32.totalorder %s749_s15, 1 }
  0x38   : > { %294 = vst.msk [vmem:[#allocation2] sm:$0xf] %vm293_vm0, %v761_v0  ;;  %295 = vst.msk [vmem:[#allocation3] sm:$0xf] %vm293_vm0, %v761_v0  ;;  %v299_v2 = vcombine.high %v296_v1, %v296_v1  ;;  %v302_v3 = vsel %vm301_vm1, %v296_v1, -inf }
  0x39   : > { %v303_v4 = vrot.slane %v302_v3, 4  ;;  %v348_v36 = vshrl.u32 %v347_v31, 7  ;;  %v297_v40 = vld [vmem:[%s883_s20] sm:$0x3]  ;;  %s946_s15 = smov (!%p275_p7, %s749_s15), 1 }
  0x3a   : > { %v309_v5 = vsel %vm301_vm1, %v299_v2, -inf  ;;  %s571_s23 = sshll.u32 %s946_s15, 2 }
  0x3b   : > { %v304_v6 = vmax.f32 %v302_v3, %v303_v4  ;;  %v310_v7 = vrot.slane %v309_v5, 4  ;;  %v351_v38 = vsub.s32 0, %v348_v36  ;;  %v355_v39 = vsub.s32 1, %v348_v36  ;;  %s281_s21 = scalar_lea.vmem %s932_s2, %s571_s23  ;;  %s288_s27 = scalar_lea.vmem %s933_s3, %s571_s23 }
  0x3d   : > { %v305_v8 = vrot.slane %v304_v6, 2  ;;  %v311_v9 = vmax.f32 %v309_v5, %v310_v7  ;;  %v352_v41 = vrot.slane %v297_v40, %v351_v38  ;;  %v356_v42 = vrot.slane %v297_v40, %v355_v39 }
  0x3f   : > { %v306_v10 = vmax.f32 %v304_v6, %v305_v8  ;;  %v312_v11 = vrot.slane %v311_v9, 2  ;;  %vm357_vm2 = vcmp.eq.s32.totalorder %v352_v41, %v348_v36  ;;  %vm358_vm3 = vcmp.eq.s32.totalorder %v356_v42, %v348_v36  ;;  %v363_v61 = vld [vmem:[#allocation2] sm:$0xf] }
  0x40   : > { %v573_v44 = vsel %vm357_vm2, 1.0, %v761_v0  ;;  %v574_v45 = vsel %vm358_vm3, 1.0, %v761_v0  ;;  %v380_v0 = vld [vmem:[#allocation3] sm:$0xf] }
  0x41   : > { %v307_v12 = vrot.slane %v306_v10, 1  ;;  %v313_v13 = vmax.f32 %v311_v9, %v312_v11  ;;  %v366_v48 = vcombine.low %v573_v44, %v574_v45 }
  0x43   : > { %v308_v14 = vmax.f32 %v306_v10, %v307_v12  ;;  %v314_v15 = vrot.slane %v313_v13, 1 }
  0x45   : > { %v315_v16 = vmax.f32 %v313_v13, %v314_v15 }
  0x47   : > { %v318_v17 = vcombine.low %v308_v14, %v315_v16 }
  0x49   : > { %v320_v18 = vsub.f32 %v296_v1, %v318_v17 }
  0x4b   : > { %v321_v19 = vmul.f32 1.442695, %v320_v18 }
  0x4d   : > { %641 = vpow2.f32 %v321_v19 }
  0x5a   : > { %v642_v20 = vpop.eup %641 }
  0x5b   : > { %v324_v21 = vcombine.high %v642_v20, %v642_v20  ;;  %v326_v22 = vsel %vm301_vm1, %v642_v20, 0.0 }
  0x5c   : > { %v327_v23 = vrot.slane %v326_v22, 4 }
  0x5d   : > { %v333_v24 = vsel %vm301_vm1, %v324_v21, 0.0 }
  0x5e   : > { %v328_v25 = vadd.f32 %v327_v23, %v326_v22  ;;  %v334_v26 = vrot.slane %v333_v24, 4 }
  0x60   : > { %v329_v27 = vrot.slane %v328_v25, 2  ;;  %v335_v28 = vadd.f32 %v334_v26, %v333_v24 }
  0x62   : > { %v330_v29 = vadd.f32 %v329_v27, %v328_v25  ;;  %v336_v30 = vrot.slane %v335_v28, 2 }
  0x64   : > { %v331_v32 = vrot.slane %v330_v29, 1  ;;  %v337_v33 = vadd.f32 %v336_v30, %v335_v28 }
  0x66   : > { %v332_v34 = vadd.f32 %v331_v32, %v330_v29  ;;  %v338_v35 = vrot.slane %v337_v33, 1 }
  0x68   : > { %v339_v37 = vadd.f32 %v338_v35, %v337_v33  ;;  %643 = vrcp.f32 %v332_v34 }
  0x6a   : > { %645 = vrcp.f32 %v339_v37 }
  0x75   : > { %v644_v43 = vpop.eup %643 }
  0x77   : > { %v646_v46 = vpop.eup %645 }
  0x78   : > { %v344_v47 = vcombine.low %v644_v43, %v646_v46 }
  0x7a   : > { %v346_v49 = vmul.f32 %v642_v20, %v344_v47 }
  0x7c   : > { %v368_v50 = vmul.f32 %v366_v48, %v346_v49  ;;  %v381_v51 = vmul.f32 %v346_v49, %v346_v49 }
  0x7e   : > { %v370_v52 = vcombine.high %v368_v50, %v368_v50  ;;  %v372_v53 = vsel %vm301_vm1, %v368_v50, 0.0  ;;  %v382_v54 = vadd.f32 %v381_v51, %v366_v48 }
  0x80   : > { %v373_v55 = vsel %vm301_vm1, %v370_v52, 0.0  ;;  %v384_v56 = vcombine.high %v382_v54, %v382_v54  ;;  %v386_v57 = vsel %vm301_vm1, %v382_v54, 0.0 }
  0x81   : > { %v374_v58 = vadd.f32 %v373_v55, %v372_v53 }
  0x82   : > { %v387_v59 = vsel %vm301_vm1, %v384_v56, 0.0 }
  0x83   : > { %375 = vadd.xlane.f32.xlu0 %v374_v58  ;;  %v388_v60 = vadd.f32 %v387_v59, %v386_v57 }
  0x87   : > { %389 = vadd.xlane.f32.xlu0 %v388_v60 }
 0x10c   : > { %v376_v62 = vpop.xlane.xlu0 %375 }
 0x10d   : > { %v377_v63 = vadd.f32 %v376_v62, %v363_v61 }
 0x10f   : > { %379 = vst.msk [vmem:[#allocation2] sm:$0xf] %vm293_vm0, %v377_v63 }
 0x110   : > { %v390_v1 = vpop.xlane.xlu0 %389 }
 0x111   : > { %v391_v2 = vadd.f32 %v390_v1, %v380_v0 }
 0x113   : > { %392 = vst.msk [vmem:[#allocation3] sm:$0xf] %vm293_vm0, %v391_v2 }
 0x116   : > { %v396_v3 = vld [vmem:[#allocation2] sm:$0xf] }
 0x117   : > { %397 = vst.msk [vmem:[%s281_s21] sm:$0xf] %vm293_vm0, %v396_v3 }
 0x11a   : > { %v398_v4 = vld [vmem:[#allocation3] sm:$0xf] }
 0x11b   : > { %399 = vst.msk [vmem:[%s288_s27] sm:$0xf] %vm293_vm0, %v398_v4 }
 0x11c PF: > { %s20_s17 = sadd.s32 1, %s757_s17   ;;  %s938_s12 = smov %s741_s13 }
 0x11d   : > { %p17_p9 = scmp.ge.s32.totalorder %s20_s17, 4   ;;  %s939_s13 = smov %s745_s14 }
 0x11e   : > { %s940_s14 = smov %s831_s24  ;;  %s941_s15 = smov %s753_s16 }
 0x11f   : > { %s942_s16 = smov %s944_s19  ;;  %19 = sbr.rel (!%p17_p9) target bundleno = 6 (0x6), region = 101 }
 0x124   :  { %445 = vsyncpa [#allocation5], 1 }
 0x125   :  { %447 = vsyncpa [#allocation5 + $0x1], 1 }
 0x126   :  { %448 = vsyncpa [#allocation7], 1 }
 0x127   :  { %450 = vsyncpa [#allocation7 + $0x1], 1 }

</bundles_post_ra>
